<compile_context>
chip_gen: v6e
topology: v6e:2x2x1
jax: 0.10.0
libtpu: 0.0.40
codegen_flags: <defaults>
</compile_context>

<pallas_src>
import jax
import jax.numpy as jnp
from jax import lax
from jax.experimental import pallas as pl
from jax.experimental.pallas import tpu as pltpu

LANES = 128              # vreg lane width (minor dim of the streamed slab)
SUBLANES = 8             # f32 vreg sublane count
ROW_ALIGN = 32           # sublane alignment safe for f32 / bf16 / int8 packing
MAX_BLOCK_ROWS = 2048    # 2048 x 128 x 4B = 1 MiB of f32 per input per grid step
VMEM_LIMIT_BYTES = 32 * 1024 * 1024


def _cdiv(a, b):
    return -(-a // b)


def _round_up(x, m):
    return _cdiv(x, m) * m


def _num_tensorcores():
    """2 TensorCores per chip on v7x; 1 on v5e/v6e (and as a safe default)."""
    try:
        kind = jax.devices()[0].device_kind.lower()
    except Exception:
        return 1
    return 2 if "v7" in kind else 1


def _make_partial_sums_kernel(rows, block_rows, blocks_per_part):
    """Kernel accumulating (8, 128) vector partials of sum(a*b), sum(a), sum(b).

    The output block (1, 3, 8, 128) is indexed only by the outer (core) grid
    axis, so it stays VMEM-resident across the inner ("arbitrary") axis ->
    classic accumulator pattern.  The ragged tail / padded grid steps are
    masked on a pl.when-gated cold path only.
    """

    def kernel(a_ref, b_ref, out_ref):
        part = pl.program_id(0)
        step = pl.program_id(1)

        @pl.when(step == 0)
        def _():
            out_ref[...] = jnp.zeros_like(out_ref)

        a = a_ref[...].astype(jnp.float32)
        b = b_ref[...].astype(jnp.float32)

        def accumulate(av, bv):
            # Reduce the row axis in groups of 8 sublanes: pure vreg adds on the
            # VPU, fully hidden under the streaming DMA.  The cross-lane (XLU)
            # reduce of the tiny partials is deferred to the JAX epilogue.
            shape3 = (-1, SUBLANES, LANES)
            out_ref[0, 0] += jnp.sum((av * bv).reshape(shape3), axis=0)
            out_ref[0, 1] += jnp.sum(av.reshape(shape3), axis=0)
            out_ref[0, 2] += jnp.sum(bv.reshape(shape3), axis=0)

        # Valid-row count of this *logical* block (un-clamped global index).
        g = part * blocks_per_part + step
        valid = rows - g * block_rows            # <= 0 for padded grid steps
        is_full = valid >= block_rows

        @pl.when(is_full)                        # hot path: no masking cost
        def _():
            accumulate(a, b)

        @pl.when(jnp.logical_not(is_full))       # cold path: ragged / padded block
        def _():
            row_ids = lax.broadcasted_iota(jnp.int32, (block_rows, LANES), 0)
            keep = row_ids < valid
            # Select (not multiply): OOB padding is unspecified and may hold
            # NaN/Inf bit patterns; where() guarantees exact zeros.
            accumulate(jnp.where(keep, a, 0.0), jnp.where(keep, b, 0.0))

    return kernel


def _sums_call(a2d, b2d, rows, num_parts):
    block_rows = min(MAX_BLOCK_ROWS, _round_up(rows, ROW_ALIGN))
    total_blocks = _cdiv(rows, block_rows)
    blocks_per_part = _cdiv(total_blocks, num_parts)

    def in_map(c, i):
        g = c * blocks_per_part + i
        # Clamp so padded grid steps never issue a fully out-of-bounds DMA;
        # their contribution is zeroed by the in-kernel mask (valid <= 0).
        return (jnp.minimum(g, total_blocks - 1), 0)

    def out_map(c, i):
        return (c, 0, 0, 0)

    if num_parts > 1:
        # v7x: actually engage both TensorCores on the leading axis.
        semantics = (pltpu.CORE_PARALLEL, pltpu.ARBITRARY)
    else:
        # Single-TC chips: the leading axis has size 1; plain serial loop.
        semantics = ("arbitrary", "arbitrary")

    kernel = _make_partial_sums_kernel(rows, block_rows, blocks_per_part)

    partials = pl.pallas_call(
        kernel,
        out_shape=jax.ShapeDtypeStruct(
            (num_parts, 3, SUBLANES, LANES), jnp.float32),
        grid_spec=pltpu.PrefetchScalarGridSpec(
            num_scalar_prefetch=0,
            grid=(num_parts, blocks_per_part),
            in_specs=[
                pl.BlockSpec((block_rows, LANES), in_map),
                pl.BlockSpec((block_rows, LANES), in_map),
            ],
            out_specs=pl.BlockSpec((1, 3, SUBLANES, LANES), out_map),
        ),
        compiler_params=pltpu.CompilerParams(
            dimension_semantics=semantics,
            vmem_limit_bytes=VMEM_LIMIT_BYTES,
        ),
    )(a2d, b2d)

    # Tiny final reduce; XLA fuses it with the scalar dice epilogue below into
    # one small kernel, so there is nothing to gain from folding it in-kernel.
    sums = jnp.sum(partials, axis=(0, 2, 3))
    return sums[0], sums[1], sums[2]


def _to_lane_dense(x):
    """Flatten to a lane-dense [rows, 128] slab in the input's NATIVE dtype.

    When x.size % 128 == 0 (the common case) this is a pure reshape — no pad
    concatenate, no extra HBM traffic.  Narrow dtypes (int8/bool masks) pass
    through unchanged; the kernel upcasts after load.
    """
    flat = x.reshape(-1)
    rem = flat.size % LANES
    if rem:
        # TODO(synk): size % 128 != 0 inputs still pay one pad copy here; a
        # manual-DMA tail block inside the kernel would remove it.
        flat = jnp.concatenate([flat, jnp.zeros((LANES - rem,), flat.dtype)])
    return flat.reshape(-1, LANES)


def _global_sums(a, b):
    """(sum(a*b), sum(a), sum(b)) as f32 scalars via one streaming Pallas kernel."""
    assert a.shape == b.shape, (a.shape, b.shape)
    a2d = _to_lane_dense(a)
    b2d = _to_lane_dense(b)
    rows = a2d.shape[0]

    num_parts = _num_tensorcores()
    if num_parts > 1:
        try:
            return _sums_call(a2d, b2d, rows, num_parts)
        except Exception:
            # TODO(synk): CORE_PARALLEL path unavailable on this chip/jaxlib;
            # fall back to the single-core configuration below.
            pass
    return _sums_call(a2d, b2d, rows, 1)


def binary_loss_dice(model_output, target):
    """Replicates BinaryLoss(option='dice', mode_single=True).forward."""
    inter, sum_a, sum_b = _global_sums(model_output, target)

    # compute_conditional_probability(A, B): sum(A*B)/sum(B), 0.0 if sum(B)==0
    p_a_given_b = jnp.where(sum_b != 0, inter / sum_b, jnp.float32(0.0))
    # compute_conditional_probability(B, A): sum(A*B)/sum(A), 0.0 if sum(A)==0
    p_b_given_a = jnp.where(sum_a != 0, inter / sum_a, jnp.float32(0.0))

    alpha, beta, gamma = 0.5, 0.5, 1.0
    denom = (alpha * (1.0 / p_a_given_b - 1.0)
             + beta * (1.0 / p_b_given_a - 1.0) + gamma)
    dice = 1.0 / denom
    return 1.0 - dice


def _reference_loss(model_output, target):
    a = model_output.astype(jnp.float32)
    b = target.astype(jnp.float32)
    inter = jnp.sum(a * b)
    sum_a = jnp.sum(a)
    sum_b = jnp.sum(b)
    p_ab = jnp.where(sum_b != 0, inter / sum_b, 0.0)
    p_ba = jnp.where(sum_a != 0, inter / sum_a, 0.0)
    denom = 0.5 * (1.0 / p_ab - 1.0) + 0.5 * (1.0 / p_ba - 1.0) + 1.0
    return 1.0 - 1.0 / denom


if __name__ == "__main__":
    key = jax.random.PRNGKey(0)
    keys = jax.random.split(key, 6)

    def make_pair(ka, kb, shape):
        mo = jax.nn.sigmoid(jax.random.normal(ka, shape, jnp.float32))
        tg = (jax.random.uniform(kb, shape) > 0.5).astype(jnp.float32)
        return mo, tg

    cases = [
        ((2, 4, 16, 16), keys[0], keys[1]),    # module-scale shape, single block
        ((2, 9, 128, 128), keys[2], keys[3]),  # multi-block + masked ragged tail
        ((2, 3, 7, 11), keys[4], keys[5]),     # size % 128 != 0 (pad fallback path)
    ]
    for shape, ka, kb in cases:
        mo, tg = make_pair(ka, kb, shape)
        loss = jax.block_until_ready(binary_loss_dice(mo, tg))
        ref = jax.block_until_ready(_reference_loss(mo, tg))
        assert jnp.allclose(loss, ref, rtol=1e-4, atol=1e-5), (shape, loss, ref)
    print("KERNEL_OK")
</pallas_src>

<mosaic_0001>
module attributes {stable_mosaic.version = 11 : i64} {
  func.func @kernel(%arg0: i32, %arg1: i32, %arg2: memref<32x128xf32, #tpu.memory_space<vmem>>, %arg3: memref<32x128xf32, #tpu.memory_space<vmem>>, %arg4: memref<1x3x8x128xf32, #tpu.memory_space<vmem>>) attributes {dimension_semantics = [#tpu.dimension_semantics<arbitrary>, #tpu.dimension_semantics<arbitrary>], iteration_bounds = array<i64: 1, 1>, scalar_prefetch = 0 : i64, scratch_operands = 0 : i64, tpu.core_type = #tpu.core_type<tc>, window_params = [{transform_indices = @transform_0, window_bounds = array<i64: 32, 128>}, {transform_indices = @transform_1, window_bounds = array<i64: 32, 128>}, {transform_indices = @transform_2, window_bounds = array<i64: 1, 3, 8, 128>}]} {
    %c0_i32 = arith.constant 0 : i32
    %0 = arith.cmpi eq, %arg1, %c0_i32 : i32
    %1 = arith.extui %0 : i1 to i32
    %c0_i32_0 = arith.constant 0 : i32
    %2 = arith.cmpi ne, %1, %c0_i32_0 : i32
    scf.if %2 {
      %cst = arith.constant 0.000000e+00 : f32
      %15 = vector.broadcast %cst : f32 to vector<1x3x8x128xf32>
      %c0_7 = arith.constant 0 : index
      %c0_8 = arith.constant 0 : index
      %c0_9 = arith.constant 0 : index
      %c0_10 = arith.constant 0 : index
      %16 = vector.load %arg4[%c0_7, %c0_8, %c0_9, %c0_10] : memref<1x3x8x128xf32, #tpu.memory_space<vmem>>, vector<1x3x8x128xf32>
      tpu.vector_store %arg4[%c0_7, %c0_8, %c0_9, %c0_10], %15 {strides = array<i32>} : memref<1x3x8x128xf32, #tpu.memory_space<vmem>>, vector<1x3x8x128xf32>,
    } else {
    }
    %c0 = arith.constant 0 : index
    %c0_1 = arith.constant 0 : index
    %3 = vector.load %arg2[%c0, %c0_1] : memref<32x128xf32, #tpu.memory_space<vmem>>, vector<32x128xf32>
    %c0_2 = arith.constant 0 : index
    %c0_3 = arith.constant 0 : index
    %4 = vector.load %arg3[%c0_2, %c0_3] : memref<32x128xf32, #tpu.memory_space<vmem>>, vector<32x128xf32>
    %c1_i32 = arith.constant 1 : i32
    %5 = arith.muli %arg0, %c1_i32 : i32
    %6 = arith.addi %5, %arg1 : i32
    %c32_i32 = arith.constant 32 : i32
    %7 = arith.muli %6, %c32_i32 : i32
    %c16_i32 = arith.constant 16 : i32
    %8 = arith.subi %c16_i32, %7 : i32
    %c32_i32_4 = arith.constant 32 : i32
    %9 = arith.cmpi sge, %8, %c32_i32_4 : i32
    %10 = arith.extui %9 : i1 to i32
    %c0_i32_5 = arith.constant 0 : i32
    %11 = arith.cmpi ne, %10, %c0_i32_5 : i32
    scf.if %11 {
      %c0_7 = arith.constant 0 : index
      %c0_8 = arith.constant 0 : index
      %c0_9 = arith.constant 0 : index
      %c0_10 = arith.constant 0 : index
      %15 = vector.load %arg4[%c0_7, %c0_8, %c0_9, %c0_10] : memref<1x3x8x128xf32, #tpu.memory_space<vmem>>, vector<1x1x8x128xf32>
      %16 = vector.shape_cast %15 : vector<1x1x8x128xf32> to vector<8x128xf32>
      %17 = arith.mulf %3, %4 : vector<32x128xf32>
      %18 = vector.shape_cast %17 : vector<32x128xf32> to vector<4x8x128xf32>
      %cst = arith.constant dense<0.000000e+00> : vector<8x128xf32>
      %19 = vector.multi_reduction <add>, %18, %cst [0] : vector<4x8x128xf32> to vector<8x128xf32>
      %20 = arith.addf %16, %19 : vector<8x128xf32>
      %c0_11 = arith.constant 0 : index
      %c0_12 = arith.constant 0 : index
      %c0_13 = arith.constant 0 : index
      %c0_14 = arith.constant 0 : index
      %21 = vector.load %arg4[%c0_11, %c0_12, %c0_13, %c0_14] : memref<1x3x8x128xf32, #tpu.memory_space<vmem>>, vector<1x1x8x128xf32>
      %22 = vector.shape_cast %21 : vector<1x1x8x128xf32> to vector<8x128xf32>
      %23 = vector.shape_cast %20 : vector<8x128xf32> to vector<1x1x8x128xf32>
      tpu.vector_store %arg4[%c0_11, %c0_12, %c0_13, %c0_14], %23 {strides = array<i32>} : memref<1x3x8x128xf32, #tpu.memory_space<vmem>>, vector<1x1x8x128xf32>,
      %c0_15 = arith.constant 0 : index
      %c1 = arith.constant 1 : index
      %c0_16 = arith.constant 0 : index
      %c0_17 = arith.constant 0 : index
      %24 = vector.load %arg4[%c0_15, %c1, %c0_16, %c0_17] : memref<1x3x8x128xf32, #tpu.memory_space<vmem>>, vector<1x1x8x128xf32>
      %25 = vector.shape_cast %24 : vector<1x1x8x128xf32> to vector<8x128xf32>
      %26 = vector.shape_cast %3 : vector<32x128xf32> to vector<4x8x128xf32>
      %cst_18 = arith.constant dense<0.000000e+00> : vector<8x128xf32>
      %27 = vector.multi_reduction <add>, %26, %cst_18 [0] : vector<4x8x128xf32> to vector<8x128xf32>
      %28 = arith.addf %25, %27 : vector<8x128xf32>
      %c0_19 = arith.constant 0 : index
      %c1_20 = arith.constant 1 : index
      %c0_21 = arith.constant 0 : index
      %c0_22 = arith.constant 0 : index
      %29 = vector.load %arg4[%c0_19, %c1_20, %c0_21, %c0_22] : memref<1x3x8x128xf32, #tpu.memory_space<vmem>>, vector<1x1x8x128xf32>
      %30 = vector.shape_cast %29 : vector<1x1x8x128xf32> to vector<8x128xf32>
      %31 = vector.shape_cast %28 : vector<8x128xf32> to vector<1x1x8x128xf32>
      tpu.vector_store %arg4[%c0_19, %c1_20, %c0_21, %c0_22], %31 {strides = array<i32>} : memref<1x3x8x128xf32, #tpu.memory_space<vmem>>, vector<1x1x8x128xf32>,
      %c0_23 = arith.constant 0 : index
      %c2 = arith.constant 2 : index
      %c0_24 = arith.constant 0 : index
      %c0_25 = arith.constant 0 : index
      %32 = vector.load %arg4[%c0_23, %c2, %c0_24, %c0_25] : memref<1x3x8x128xf32, #tpu.memory_space<vmem>>, vector<1x1x8x128xf32>
      %33 = vector.shape_cast %32 : vector<1x1x8x128xf32> to vector<8x128xf32>
      %34 = vector.shape_cast %4 : vector<32x128xf32> to vector<4x8x128xf32>
      %cst_26 = arith.constant dense<0.000000e+00> : vector<8x128xf32>
      %35 = vector.multi_reduction <add>, %34, %cst_26 [0] : vector<4x8x128xf32> to vector<8x128xf32>
      %36 = arith.addf %33, %35 : vector<8x128xf32>
      %c0_27 = arith.constant 0 : index
      %c2_28 = arith.constant 2 : index
      %c0_29 = arith.constant 0 : index
      %c0_30 = arith.constant 0 : index
      %37 = vector.load %arg4[%c0_27, %c2_28, %c0_29, %c0_30] : memref<1x3x8x128xf32, #tpu.memory_space<vmem>>, vector<1x1x8x128xf32>
      %38 = vector.shape_cast %37 : vector<1x1x8x128xf32> to vector<8x128xf32>
      %39 = vector.shape_cast %36 : vector<8x128xf32> to vector<1x1x8x128xf32>
      tpu.vector_store %arg4[%c0_27, %c2_28, %c0_29, %c0_30], %39 {strides = array<i32>} : memref<1x3x8x128xf32, #tpu.memory_space<vmem>>, vector<1x1x8x128xf32>,
    } else {
    }
    %true = arith.constant true
    %12 = arith.xori %9, %true : i1
    %13 = arith.extui %12 : i1 to i32
    %c0_i32_6 = arith.constant 0 : i32
    %14 = arith.cmpi ne, %13, %c0_i32_6 : i32
    scf.if %14 {
      %15 = tpu.iota {dimensions = array<i32: 0>} : vector<32x128xi32>
      %16 = vector.broadcast %8 : i32 to vector<32x128xi32>
      %17 = arith.cmpi slt, %15, %16 : vector<32x128xi32>
      %cst = arith.constant 0.000000e+00 : f32
      %18 = vector.broadcast %cst : f32 to vector<32x128xf32>
      %19 = arith.select %17, %3, %18 : vector<32x128xi1>, vector<32x128xf32>
      %cst_7 = arith.constant 0.000000e+00 : f32
      %20 = vector.broadcast %cst_7 : f32 to vector<32x128xf32>
      %21 = arith.select %17, %4, %20 : vector<32x128xi1>, vector<32x128xf32>
      %c0_8 = arith.constant 0 : index
      %c0_9 = arith.constant 0 : index
      %c0_10 = arith.constant 0 : index
      %c0_11 = arith.constant 0 : index
      %22 = vector.load %arg4[%c0_8, %c0_9, %c0_10, %c0_11] : memref<1x3x8x128xf32, #tpu.memory_space<vmem>>, vector<1x1x8x128xf32>
      %23 = vector.shape_cast %22 : vector<1x1x8x128xf32> to vector<8x128xf32>
      %24 = arith.mulf %19, %21 : vector<32x128xf32>
      %25 = vector.shape_cast %24 : vector<32x128xf32> to vector<4x8x128xf32>
      %cst_12 = arith.constant dense<0.000000e+00> : vector<8x128xf32>
      %26 = vector.multi_reduction <add>, %25, %cst_12 [0] : vector<4x8x128xf32> to vector<8x128xf32>
      %27 = arith.addf %23, %26 : vector<8x128xf32>
      %c0_13 = arith.constant 0 : index
      %c0_14 = arith.constant 0 : index
      %c0_15 = arith.constant 0 : index
      %c0_16 = arith.constant 0 : index
      %28 = vector.load %arg4[%c0_13, %c0_14, %c0_15, %c0_16] : memref<1x3x8x128xf32, #tpu.memory_space<vmem>>, vector<1x1x8x128xf32>
      %29 = vector.shape_cast %28 : vector<1x1x8x128xf32> to vector<8x128xf32>
      %30 = vector.shape_cast %27 : vector<8x128xf32> to vector<1x1x8x128xf32>
      tpu.vector_store %arg4[%c0_13, %c0_14, %c0_15, %c0_16], %30 {strides = array<i32>} : memref<1x3x8x128xf32, #tpu.memory_space<vmem>>, vector<1x1x8x128xf32>,
      %c0_17 = arith.constant 0 : index
      %c1 = arith.constant 1 : index
      %c0_18 = arith.constant 0 : index
      %c0_19 = arith.constant 0 : index
      %31 = vector.load %arg4[%c0_17, %c1, %c0_18, %c0_19] : memref<1x3x8x128xf32, #tpu.memory_space<vmem>>, vector<1x1x8x128xf32>
      %32 = vector.shape_cast %31 : vector<1x1x8x128xf32> to vector<8x128xf32>
      %33 = vector.shape_cast %19 : vector<32x128xf32> to vector<4x8x128xf32>
      %cst_20 = arith.constant dense<0.000000e+00> : vector<8x128xf32>
      %34 = vector.multi_reduction <add>, %33, %cst_20 [0] : vector<4x8x128xf32> to vector<8x128xf32>
      %35 = arith.addf %32, %34 : vector<8x128xf32>
      %c0_21 = arith.constant 0 : index
      %c1_22 = arith.constant 1 : index
      %c0_23 = arith.constant 0 : index
      %c0_24 = arith.constant 0 : index
      %36 = vector.load %arg4[%c0_21, %c1_22, %c0_23, %c0_24] : memref<1x3x8x128xf32, #tpu.memory_space<vmem>>, vector<1x1x8x128xf32>
      %37 = vector.shape_cast %36 : vector<1x1x8x128xf32> to vector<8x128xf32>
      %38 = vector.shape_cast %35 : vector<8x128xf32> to vector<1x1x8x128xf32>
      tpu.vector_store %arg4[%c0_21, %c1_22, %c0_23, %c0_24], %38 {strides = array<i32>} : memref<1x3x8x128xf32, #tpu.memory_space<vmem>>, vector<1x1x8x128xf32>,
      %c0_25 = arith.constant 0 : index
      %c2 = arith.constant 2 : index
      %c0_26 = arith.constant 0 : index
      %c0_27 = arith.constant 0 : index
      %39 = vector.load %arg4[%c0_25, %c2, %c0_26, %c0_27] : memref<1x3x8x128xf32, #tpu.memory_space<vmem>>, vector<1x1x8x128xf32>
      %40 = vector.shape_cast %39 : vector<1x1x8x128xf32> to vector<8x128xf32>
      %41 = vector.shape_cast %21 : vector<32x128xf32> to vector<4x8x128xf32>
      %cst_28 = arith.constant dense<0.000000e+00> : vector<8x128xf32>
      %42 = vector.multi_reduction <add>, %41, %cst_28 [0] : vector<4x8x128xf32> to vector<8x128xf32>
      %43 = arith.addf %40, %42 : vector<8x128xf32>
      %c0_29 = arith.constant 0 : index
      %c2_30 = arith.constant 2 : index
      %c0_31 = arith.constant 0 : index
      %c0_32 = arith.constant 0 : index
      %44 = vector.load %arg4[%c0_29, %c2_30, %c0_31, %c0_32] : memref<1x3x8x128xf32, #tpu.memory_space<vmem>>, vector<1x1x8x128xf32>
      %45 = vector.shape_cast %44 : vector<1x1x8x128xf32> to vector<8x128xf32>
      %46 = vector.shape_cast %43 : vector<8x128xf32> to vector<1x1x8x128xf32>
      tpu.vector_store %arg4[%c0_29, %c2_30, %c0_31, %c0_32], %46 {strides = array<i32>} : memref<1x3x8x128xf32, #tpu.memory_space<vmem>>, vector<1x1x8x128xf32>,
    } else {
    }
    return
  }
  func.func @transform_0(%arg0: i32, %arg1: i32) -> (i32, i32) {
    %c1_i32 = arith.constant 1 : i32
    %0 = arith.muli %arg0, %c1_i32 : i32
    %1 = arith.addi %0, %arg1 : i32
    %c0_i32 = arith.constant 0 : i32
    %2 = arith.minsi %1, %c0_i32 : i32
    %c0_i32_0 = arith.constant 0 : i32
    %c0_i32_1 = arith.constant 0 : i32
    return %2, %c0_i32_0 : i32, i32
  }
  func.func @transform_1(%arg0: i32, %arg1: i32) -> (i32, i32) {
    %c1_i32 = arith.constant 1 : i32
    %0 = arith.muli %arg0, %c1_i32 : i32
    %1 = arith.addi %0, %arg1 : i32
    %c0_i32 = arith.constant 0 : i32
    %2 = arith.minsi %1, %c0_i32 : i32
    %c0_i32_0 = arith.constant 0 : i32
    %c0_i32_1 = arith.constant 0 : i32
    return %2, %c0_i32_0 : i32, i32
  }
  func.func @transform_2(%arg0: i32, %arg1: i32) -> (i32, i32, i32, i32) {
    %c0_i32 = arith.constant 0 : i32
    %c0_i32_0 = arith.constant 0 : i32
    %c0_i32_1 = arith.constant 0 : i32
    %c0_i32_2 = arith.constant 0 : i32
    return %arg0, %c0_i32, %c0_i32_0, %c0_i32_1 : i32, i32, i32, i32
  }
}

</mosaic_0001>

<bundles_post_ra>
// kernel: tpu_custom_call.1
= control target key start
LH: loop header
LB: loop body
LE: loop exit
PB: predicated region body
PF: predicated region fallthrough
CT: control target
= control target key end

     0   :  { %7 = vsyncpa [#allocation3], 0  ;;  %s296_s0 = inlined_call_operand.hbm [shape: f32[16,128], index: 0, kind: input, shape index: {}]   ;;  %s297_s1 = inlined_call_operand.hbm [shape: f32[16,128], index: 1, kind: input, shape index: {}]   ;;  %s298_s2 = inlined_call_operand.hbm [shape: f32[1,3,8,128], index: 2, kind: output, shape index: {}]  }
   0x1   :  { %8 = vsyncpa [#allocation6], 0 }
   0x2   :  { %9 = vsyncpa [#allocation4], 0 }
   0x3   :  { %20 = vsyncadd [#allocation3], 256  ;;  %s258_s9 = smov [#allocation2]  }
   0x4   :  { %s25_s10 = sshll.u32 %s258_s9, 4  ;;  %s26_s10 = int_to_ptr.vmem [resolvable:$true] %s25_s10 }
   0x5   :  { %s200_s11 = scalar_lea.vmem %s26_s10, 256  ;;  %s204_s12 = scalar_lea.vmem %s26_s10, 512 }
   0x6   :  { %p201_p0 = scmp.ne.s32.totalorder %s26_s10, %s200_s11  ;;  %p205_p1 = scmp.lt.s32.totalorder %s26_s10, %s26_s10 }
   0x7   :  { %p206_p2 = scmp.lt.s32.totalorder %s204_s12, %s200_s11 }
   0x9   :  { %p207_p3 = por %p206_p2, %p205_p1 }
   0xb   :  { %p208_p4 = pnand %p207_p3, %p201_p0 }
   0xd   :  { %211 = shalt.err (!%p208_p4)
}
   0xe   :  { %s259_s13 = smov 128   ;;  %s260_s14 = smov 8  }
   0xf   :  { %31 = dma.hbm_to_vmem [thread:$0]  %s296_s0, 256, %s26_s10, [#allocation3], %s259_s13, %s259_s13, %s260_s14  }
  0x10   :  { %42 = vsyncadd [#allocation6], 256  ;;  %s261_s17 = smov [#allocation5]  }
  0x11   :  { %s47_s18 = sshll.u32 %s261_s17, 4  ;;  %s48_s18 = int_to_ptr.vmem [resolvable:$true] %s47_s18 }
  0x12   :  { %s220_s19 = scalar_lea.vmem %s48_s18, 256  ;;  %s224_s20 = scalar_lea.vmem %s48_s18, 512 }
  0x13   :  { %p221_p5 = scmp.ne.s32.totalorder %s48_s18, %s220_s19  ;;  %p225_p6 = scmp.lt.s32.totalorder %s48_s18, %s48_s18 }
  0x14   :  { %p226_p7 = scmp.lt.s32.totalorder %s224_s20, %s220_s19 }
  0x16   :  { %p227_p8 = por %p226_p7, %p225_p6 }
  0x18   :  { %p228_p9 = pnand %p227_p8, %p221_p5 }
  0x1a   :  { %231 = shalt.err (!%p228_p9)
}
  0x1b   :  { %53 = dma.hbm_to_vmem [thread:$0]  %s297_s1, 256, %s48_s18, [#allocation6], %s259_s13, %s259_s13, %s260_s14  }
  0x1c   :  { %252 = dma.done.wait [#allocation3], 512  }
  0x1d   :  { %253 = vsyncadd [#allocation3], 4294966784 }
  0x1e   :  { %254 = dma.done.wait [#allocation6], 512  }
  0x1f   :  { %255 = vsyncadd [#allocation6], 4294966784  ;;  %v79_v0 = vld [vmem:[#allocation2] sm:$0xff]  ;;  %v80_v1 = vld [vmem:[#allocation2 + $0x8] sm:$0xff]  ;;  %s262_s0 = smov [#allocation7]  }
  0x20   :  { %v83_v2 = vld [vmem:[#allocation5] sm:$0xff]  ;;  %v84_v3 = vld [vmem:[#allocation5 + $0x8] sm:$0xff]  ;;  %v152_v5 = vadd.f32 %v80_v1, %v79_v0  ;;  %s169_s23 = sshll.u32 %s262_s0, 4  ;;  %s170_s23 = int_to_ptr.vmem [resolvable:$true] %s169_s23 }
  0x21   :  { %v141_v4 = vmul.f32 %v83_v2, %v79_v0  ;;  %v142_v6 = vmul.f32 %v84_v3, %v80_v1  ;;  %v159_v7 = vadd.f32 %v84_v3, %v83_v2  ;;  %s232_s1 = scalar_lea.vmem %s170_s23, 384  ;;  %p237_p11 = scmp.lt.s32.totalorder %s170_s23, %s170_s23 }
  0x22   :  { %156 = vst [vmem:[#allocation7 + $0x8] sm:$0xff] %v152_v5  ;;  %p233_p10 = scmp.ne.s32.totalorder %s170_s23, %s232_s1  ;;  %p238_p12 = scmp.lt.s32.totalorder %s232_s1, %s232_s1 }
  0x23   :  { %v145_v8 = vadd.f32 %v142_v6, %v141_v4  ;;  %163 = vst [vmem:[#allocation7 + $0x10] sm:$0xff] %v159_v7 }
  0x24   :  { %p239_p13 = por %p238_p12, %p237_p11 }
  0x25   :  { %149 = vst [vmem:[#allocation7] sm:$0xff] %v145_v8 }
  0x26   :  { %p240_p0 = pnand %p239_p13, %p233_p10 }
  0x28   :  { %243 = shalt.err (!%p240_p0)
}
  0x29   :  { %175 = dma.vmem_to_hbm [thread:$0]  %s170_s23, 384, %s298_s2, [#allocation4], %s259_s13, %s259_s13, %s260_s14  }
  0x2a   :  { %256 = dma.done.wait [#allocation4], 384  }
  0x2b   :  { %257 = vsyncadd [#allocation4], 4294966912 }
  0x2c   :  { %179 = vsyncpa [#allocation3], 1 }
  0x2d   :  { %180 = vsyncpa [#allocation6], 1 }
  0x2e   :  { %181 = vsyncpa [#allocation4], 1 }

</bundles_post_ra>
